<compile_context>
chip_gen: v7x
topology: tpu7x:2x2x1
jax: 0.10.0
libtpu: 0.0.40
codegen_flags: <defaults>
</compile_context>

<pallas_src>
import functools

import jax
import jax.numpy as jnp
from jax.experimental import pallas as pl
from jax.experimental.pallas import tpu as pltpu


def _round_up(x, m):
    return (x + m - 1) // m * m


# --------------------------------------------------------------------------- #
# Kernel
# --------------------------------------------------------------------------- #
def dblock_kernel(x_ref, w12_ref, b12_ref, wh_ref, bh_ref, out_ref, *, hidden_size):
    x = x_ref[...]                                             # (tm, in)

    # Fused gate matmul: one MXU pass produces [h1 | h2] of width 2*hidden.
    h = jnp.dot(x, w12_ref[...], preferred_element_type=jnp.float32) + b12_ref[...]
    t = jnp.tanh(h[:, :hidden_size]) * jax.nn.sigmoid(h[:, hidden_size:])
    t = t.astype(wh_ref.dtype)                                 # MXU operand dtype

    # Fused (and lane-padded) head matmul: [mu | logsigma | 0-pad].
    out = jnp.dot(t, wh_ref[...], preferred_element_type=jnp.float32) + bh_ref[...]

    # Single lane-dense output store (width is a multiple of 128).
    out_ref[...] = out.astype(out_ref.dtype)


# --------------------------------------------------------------------------- #
# Param handling
# --------------------------------------------------------------------------- #
def init_dblock_params(key, input_size, hidden_size, output_size, dtype=jnp.float32):
    """Per-layer params, same shapes as the PyTorch nn.Linear layers, stored
    transposed so the kernel computes x @ W + b."""
    ks = jax.random.split(key, 8)
    s_in = 1.0 / jnp.sqrt(input_size)
    s_h = 1.0 / jnp.sqrt(hidden_size)
    return {
        "w1": (jax.random.normal(ks[0], (input_size, hidden_size)) * s_in).astype(dtype),
        "b1": (jax.random.normal(ks[1], (1, hidden_size)) * s_in).astype(dtype),
        "w2": (jax.random.normal(ks[2], (input_size, hidden_size)) * s_in).astype(dtype),
        "b2": (jax.random.normal(ks[3], (1, hidden_size)) * s_in).astype(dtype),
        "wmu": (jax.random.normal(ks[4], (hidden_size, output_size)) * s_h).astype(dtype),
        "bmu": (jax.random.normal(ks[5], (1, output_size)) * s_h).astype(dtype),
        "wls": (jax.random.normal(ks[6], (hidden_size, output_size)) * s_h).astype(dtype),
        "bls": (jax.random.normal(ks[7], (1, output_size)) * s_h).astype(dtype),
    }


def fuse_dblock_params(p):
    """Concatenate gate / head weights once, ahead of time, and zero-pad the
    head width up to a multiple of 128 lanes for an unmasked output store.

    Returns a dict of ARRAYS ONLY (safe to pass through jax.jit); all sizes
    are recovered statically from array shapes / static kwargs."""
    w12 = jnp.concatenate([p["w1"], p["w2"]], axis=1)          # (in, 2H)
    b12 = jnp.concatenate([p["b1"], p["b2"]], axis=1)          # (1, 2H)
    wh = jnp.concatenate([p["wmu"], p["wls"]], axis=1)         # (H, 2*out)
    bh = jnp.concatenate([p["bmu"], p["bls"]], axis=1)         # (1, 2*out)

    two_out = wh.shape[1]
    n_pad = _round_up(max(two_out, 128), 128)                  # lane-dense width
    if n_pad != two_out:
        wh = jnp.pad(wh, ((0, 0), (0, n_pad - two_out)))
        bh = jnp.pad(bh, ((0, 0), (0, n_pad - two_out)))

    return {"w12": w12, "b12": b12, "w_heads": wh, "b_heads": bh}


# --------------------------------------------------------------------------- #
# Wrapper
# --------------------------------------------------------------------------- #
def dblock_forward(x, fp, *, output_size, tm=512):
    """x: (..., input_size). All leading dims are flattened into one batch
    dimension so a whole sequence is processed in one kernel launch.
    `output_size` must be a static Python int (use jit static_argnames)."""
    in_features = x.shape[-1]
    lead = x.shape[:-1]
    x2 = x.reshape(-1, in_features)
    B = x2.shape[0]

    w12, b12, wh, bh = fp["w12"], fp["b12"], fp["w_heads"], fp["b_heads"]
    two_h = w12.shape[1]
    H = two_h // 2                      # static: derived from array shape
    n_pad = wh.shape[1]                 # static: lane-padded head width

    # Row tile: multiple of 8 (sublane), capped at `tm`; pad batch to a multiple.
    tm_eff = min(tm, _round_up(B, 8))
    Bp = _round_up(B, tm_eff)
    if Bp != B:
        x2 = jnp.pad(x2, ((0, Bp - B), (0, 0)))

    grid = (Bp // tm_eff,)
    kernel = functools.partial(dblock_kernel, hidden_size=H)

    out = pl.pallas_call(
        kernel,
        out_shape=jax.ShapeDtypeStruct((Bp, n_pad), x.dtype),
        grid_spec=pltpu.PrefetchScalarGridSpec(
            num_scalar_prefetch=0,
            grid=grid,
            in_specs=[
                pl.BlockSpec((tm_eff, in_features), lambda i: (i, 0)),   # x tiles
                pl.BlockSpec((in_features, two_h), lambda i: (0, 0)),    # fused gate W (resident)
                pl.BlockSpec((1, two_h), lambda i: (0, 0)),              # fused gate b (resident)
                pl.BlockSpec((H, n_pad), lambda i: (0, 0)),              # fused head W (resident)
                pl.BlockSpec((1, n_pad), lambda i: (0, 0)),              # fused head b (resident)
            ],
            out_specs=pl.BlockSpec((tm_eff, n_pad), lambda i: (i, 0)),   # single wide output
        ),
        compiler_params=pltpu.CompilerParams(
            dimension_semantics=("parallel",),      # shard batch tiles across TCs
        ),
    )(x2, w12, b12, wh, bh)

    mu = out[:B, :output_size].reshape(*lead, output_size)
    logsigma = out[:B, output_size:2 * output_size].reshape(*lead, output_size)
    return mu, logsigma


# --------------------------------------------------------------------------- #
# Reference
# --------------------------------------------------------------------------- #
def dblock_reference(x, p):
    t = jnp.tanh(x @ p["w1"] + p["b1"]) * jax.nn.sigmoid(x @ p["w2"] + p["b2"])
    return t @ p["wmu"] + p["bmu"], t @ p["wls"] + p["bls"]


if __name__ == "__main__":
    key = jax.random.PRNGKey(0)
    k_x, k_x3, k_p = jax.random.split(key, 3)

    B, input_size, hidden_size, output_size = 8, 32, 64, 16
    params = init_dblock_params(k_p, input_size, hidden_size, output_size)
    fused = fuse_dblock_params(params)      # arrays only — jit-safe pytree

    fwd = jax.jit(dblock_forward, static_argnames=("output_size", "tm"))

    # 2-D input (B, input_size)
    x = jax.random.normal(k_x, (B, input_size), dtype=jnp.float32)
    mu, logsigma = fwd(x, fused, output_size=output_size)
    jax.block_until_ready((mu, logsigma))
    mu_ref, ls_ref = dblock_reference(x, params)
    assert mu.shape == (B, output_size) and logsigma.shape == (B, output_size)
    assert jnp.allclose(mu, mu_ref, atol=1e-5, rtol=1e-5)
    assert jnp.allclose(logsigma, ls_ref, atol=1e-5, rtol=1e-5)

    # 3-D input (T, B, input_size): whole sequence in ONE kernel launch
    T = 4
    x3 = jax.random.normal(k_x3, (T, B, input_size), dtype=jnp.float32)
    mu3, ls3 = fwd(x3, fused, output_size=output_size)
    jax.block_until_ready((mu3, ls3))
    mu3_ref, ls3_ref = dblock_reference(x3, params)
    assert mu3.shape == (T, B, output_size) and ls3.shape == (T, B, output_size)
    assert jnp.allclose(mu3, mu3_ref, atol=1e-5, rtol=1e-5)
    assert jnp.allclose(ls3, ls3_ref, atol=1e-5, rtol=1e-5)

    print("KERNEL_OK")
</pallas_src>

<mosaic_0001>
module attributes {stable_mosaic.version = 11 : i64} {
  func.func @dblock_kernel(%arg0: i32, %arg1: memref<8x32xf32, #tpu.memory_space<vmem>>, %arg2: memref<32x128xf32, #tpu.memory_space<vmem>>, %arg3: memref<1x128xf32, #tpu.memory_space<vmem>>, %arg4: memref<64x128xf32, #tpu.memory_space<vmem>>, %arg5: memref<1x128xf32, #tpu.memory_space<vmem>>, %arg6: memref<8x128xf32, #tpu.memory_space<vmem>>) attributes {dimension_semantics = [#tpu.dimension_semantics<parallel>], iteration_bounds = array<i64: 1>, scalar_prefetch = 0 : i64, scratch_operands = 0 : i64, tpu.core_type = #tpu.core_type<tc>, window_params = [{transform_indices = @transform_0, window_bounds = array<i64: 8, 32>}, {pipeline_mode = #tpu.pipeline_mode<synchronous>, transform_indices = @transform_1, window_bounds = array<i64: 32, 128>}, {pipeline_mode = #tpu.pipeline_mode<synchronous>, transform_indices = @transform_2, window_bounds = array<i64: 1, 128>}, {pipeline_mode = #tpu.pipeline_mode<synchronous>, transform_indices = @transform_3, window_bounds = array<i64: 64, 128>}, {pipeline_mode = #tpu.pipeline_mode<synchronous>, transform_indices = @transform_4, window_bounds = array<i64: 1, 128>}, {transform_indices = @transform_5, window_bounds = array<i64: 8, 128>}]} {
    %c0 = arith.constant 0 : index
    %c0_0 = arith.constant 0 : index
    %0 = vector.load %arg1[%c0, %c0_0] : memref<8x32xf32, #tpu.memory_space<vmem>>, vector<8x32xf32>
    %c0_1 = arith.constant 0 : index
    %c0_2 = arith.constant 0 : index
    %1 = vector.load %arg2[%c0_1, %c0_2] : memref<32x128xf32, #tpu.memory_space<vmem>>, vector<32x128xf32>
    %cst = arith.constant dense<0.000000e+00> : vector<8x128xf32>
    %2 = tpu.matmul %0, %1, %cst {dimension_numbers = #tpu.dot_dimension_numbers<[1], [0], [0], [1], [0, 0, 1, 1], [], []>} : vector<8x32xf32>, vector<32x128xf32>, vector<8x128xf32> -> vector<8x128xf32>
    %c0_3 = arith.constant 0 : index
    %c0_4 = arith.constant 0 : index
    %3 = vector.load %arg3[%c0_3, %c0_4] : memref<1x128xf32, #tpu.memory_space<vmem>>, vector<1x128xf32>
    %4 = vector.broadcast %3 : vector<1x128xf32> to vector<8x128xf32>
    %5 = arith.addf %2, %4 : vector<8x128xf32>
    %6 = vector.extract_strided_slice %5 {offsets = [0, 0], sizes = [8, 64], strides = [1, 1]} : vector<8x128xf32> to vector<8x64xf32>
    %7 = math.tanh %6 : vector<8x64xf32>
    %8 = vector.extract_strided_slice %5 {offsets = [0, 64], sizes = [8, 64], strides = [1, 1]} : vector<8x128xf32> to vector<8x64xf32>
    %9 = arith.negf %8 : vector<8x64xf32>
    %10 = math.exp %9 : vector<8x64xf32>
    %cst_5 = arith.constant 1.000000e+00 : f32
    %11 = vector.broadcast %cst_5 : f32 to vector<8x64xf32>
    %12 = arith.addf %11, %10 : vector<8x64xf32>
    %13 = arith.divf %11, %12 : vector<8x64xf32>
    %14 = arith.mulf %7, %13 : vector<8x64xf32>
    %c0_6 = arith.constant 0 : index
    %c0_7 = arith.constant 0 : index
    %15 = vector.load %arg4[%c0_6, %c0_7] : memref<64x128xf32, #tpu.memory_space<vmem>>, vector<64x128xf32>
    %cst_8 = arith.constant dense<0.000000e+00> : vector<8x128xf32>
    %16 = tpu.matmul %14, %15, %cst_8 {dimension_numbers = #tpu.dot_dimension_numbers<[1], [0], [0], [1], [0, 0, 1, 1], [], []>} : vector<8x64xf32>, vector<64x128xf32>, vector<8x128xf32> -> vector<8x128xf32>
    %c0_9 = arith.constant 0 : index
    %c0_10 = arith.constant 0 : index
    %17 = vector.load %arg5[%c0_9, %c0_10] : memref<1x128xf32, #tpu.memory_space<vmem>>, vector<1x128xf32>
    %18 = vector.broadcast %17 : vector<1x128xf32> to vector<8x128xf32>
    %19 = arith.addf %16, %18 : vector<8x128xf32>
    %c0_11 = arith.constant 0 : index
    %c0_12 = arith.constant 0 : index
    %20 = vector.load %arg6[%c0_11, %c0_12] : memref<8x128xf32, #tpu.memory_space<vmem>>, vector<8x128xf32>
    tpu.vector_store %arg6[%c0_11, %c0_12], %19 {strides = array<i32>} : memref<8x128xf32, #tpu.memory_space<vmem>>, vector<8x128xf32>,
    return
  }
  func.func @transform_0(%arg0: i32) -> (i32, i32) {
    %c0_i32 = arith.constant 0 : i32
    %c0_i32_0 = arith.constant 0 : i32
    return %arg0, %c0_i32 : i32, i32
  }
  func.func @transform_1(%arg0: i32) -> (i32, i32) {
    %c0_i32 = arith.constant 0 : i32
    %c0_i32_0 = arith.constant 0 : i32
    %c0_i32_1 = arith.constant 0 : i32
    return %c0_i32, %c0_i32_0 : i32, i32
  }
  func.func @transform_2(%arg0: i32) -> (i32, i32) {
    %c0_i32 = arith.constant 0 : i32
    %c0_i32_0 = arith.constant 0 : i32
    %c0_i32_1 = arith.constant 0 : i32
    return %c0_i32, %c0_i32_0 : i32, i32
  }
  func.func @transform_3(%arg0: i32) -> (i32, i32) {
    %c0_i32 = arith.constant 0 : i32
    %c0_i32_0 = arith.constant 0 : i32
    %c0_i32_1 = arith.constant 0 : i32
    return %c0_i32, %c0_i32_0 : i32, i32
  }
  func.func @transform_4(%arg0: i32) -> (i32, i32) {
    %c0_i32 = arith.constant 0 : i32
    %c0_i32_0 = arith.constant 0 : i32
    %c0_i32_1 = arith.constant 0 : i32
    return %c0_i32, %c0_i32_0 : i32, i32
  }
  func.func @transform_5(%arg0: i32) -> (i32, i32) {
    %c0_i32 = arith.constant 0 : i32
    %c0_i32_0 = arith.constant 0 : i32
    return %arg0, %c0_i32 : i32, i32
  }
}

</mosaic_0001>

<bundles_post_ra>
// kernel: dblock_forward.1
= control target key start
LH: loop header
LB: loop body
LE: loop exit
PB: predicated region body
PF: predicated region fallthrough
CT: control target
= control target key end

     0   :  { %10 = vsyncpa [#allocation3], 0  ;;  %s495_s0 = inlined_call_operand.hbm [shape: f32[8,32], index: 0, kind: input, shape index: {}]   ;;  %s496_s1 = inlined_call_operand.hbm [shape: f32[32,128], index: 1, kind: input, shape index: {}]   ;;  %s497_s2 = inlined_call_operand.vmem [shape: f32[1,128], index: 2, kind: input, shape index: {}]   ;;  %s498_s3 = inlined_call_operand.hbm [shape: f32[64,128], index: 3, kind: input, shape index: {}]   ;;  %s499_s4 = inlined_call_operand.vmem [shape: f32[1,128], index: 4, kind: input, shape index: {}]   ;;  %s500_s5 = inlined_call_operand.vmem [shape: f32[8,128], index: 5, kind: output, shape index: {}]  }
   0x1   :  { %11 = vsyncpa [#allocation5], 0  ;;  %s405_s18 = smov [#allocation4]   ;;  %s335_s22 = scalar_lea.hbm %s496_s1, 512 }
   0x2   :  { %s27_s19 = sshll.u32 %s405_s18, 4  ;;  %p336_p0 = scmp.ne.s32.totalorder %s496_s1, %s335_s22  ;;  %s28_s19 = int_to_ptr.vmem [resolvable:$true] %s27_s19 }
   0x3   :  { %p339_p1 = scmp.lt.u32.totalorder %s335_s22, %s496_s1 }
   0x5   :  { %p341_p2 = pnand %p339_p1, %p336_p0 }
   0x7   :  { %344 = shalt.err (!%p341_p2)
}
   0x8   :  { %s345_s27 = scalar_lea.vmem %s28_s19, 512  ;;  %p350_p4 = scmp.lt.s32.totalorder %s28_s19, %s28_s19 }
   0x9   :  { %p346_p3 = scmp.ne.s32.totalorder %s28_s19, %s345_s27  ;;  %p351_p5 = scmp.lt.s32.totalorder %s345_s27, %s345_s27 }
   0xb   :  { %p352_p6 = por %p351_p5, %p350_p4 }
   0xd   :  { %p353_p7 = pnand %p352_p6, %p346_p3 }
   0xf   :  { %356 = shalt.err (!%p353_p7)
}
  0x10   :  { %s406_s28 = smov 128   ;;  %s407_s29 = smov 8  }
  0x11   :  { %33 = dma.hbm_to_vmem [thread:$0]  %s496_s1, 512, %s28_s19, [#allocation5], %s406_s28, %s406_s28, %s407_s29  }
  0x12   :  { %s408_s7 = smov [#allocation2]   ;;  %s409_s9 = smov [#allocation6]  }
  0x13   :  { %s18_s8 = sshll.u32 %s408_s7, 4  ;;  %s41_s10 = sshll.u32 %s409_s9, 4  ;;  %s19_s8 = int_to_ptr.vmem [resolvable:$true] %s18_s8  ;;  %s42_s10 = int_to_ptr.vmem [resolvable:$true] %s41_s10 }
  0x14   :  { %s357_s13 = scalar_lea.hbm %s495_s0, 128 }
  0x15   :  { %p358_p8 = scmp.ne.s32.totalorder %s495_s0, %s357_s13  ;;  %p361_p9 = scmp.lt.u32.totalorder %s357_s13, %s495_s0 }
  0x17   :  { %p363_p10 = pnand %p361_p9, %p358_p8 }
  0x19   :  { %366 = shalt.err (!%p363_p10)
}
  0x1a   :  { %s367_s1 = scalar_lea.vmem %s19_s8, 128  ;;  %p372_p12 = scmp.lt.s32.totalorder %s19_s8, %s19_s8 }
  0x1b   :  { %p368_p11 = scmp.ne.s32.totalorder %s19_s8, %s367_s1  ;;  %p373_p13 = scmp.lt.s32.totalorder %s367_s1, %s367_s1 }
  0x1d   :  { %p374_p0 = por %p373_p13, %p372_p12 }
  0x1f   :  { %p375_p1 = pnand %p374_p0, %p368_p11 }
  0x21   :  { %378 = shalt.err (!%p375_p1)
}
  0x22   :  { %21 = dma.hbm_to_vmem [thread:$0]  %s495_s0, 128, %s19_s8, [#allocation3]  }
  0x23   :  { %s379_s22 = scalar_lea.hbm %s498_s3, 1024 }
  0x24   :  { %p380_p2 = scmp.ne.s32.totalorder %s498_s3, %s379_s22  ;;  %p383_p3 = scmp.lt.u32.totalorder %s379_s22, %s498_s3 }
  0x26   :  { %p385_p4 = pnand %p383_p3, %p380_p2 }
  0x28   :  { %388 = shalt.err (!%p385_p4)
}
  0x29   :  { %s389_s27 = scalar_lea.vmem %s42_s10, 1024  ;;  %p394_p6 = scmp.lt.s32.totalorder %s42_s10, %s42_s10 }
  0x2a   :  { %p390_p5 = scmp.ne.s32.totalorder %s42_s10, %s389_s27  ;;  %p395_p7 = scmp.lt.s32.totalorder %s389_s27, %s389_s27 }
  0x2c   :  { %p396_p8 = por %p395_p7, %p394_p6 }
  0x2e   :  { %p397_p9 = pnand %p396_p8, %p390_p5 }
  0x30   :  { %400 = shalt.err (!%p397_p9)
}
  0x31   :  { %47 = dma.hbm_to_vmem [thread:$0]  %s498_s3, 1024, %s42_s10, [#allocation5], %s406_s28, %s406_s28, %s407_s29  }
  0x32   :  { %401 = dma.done.wait [#allocation3], 128  }
  0x33   :  { %402 = vsyncadd [#allocation3], 4294967168 }
  0x34   :  { %403 = dma.done.wait [#allocation5], 1536  }
  0x35   :  { %404 = vsyncadd [#allocation5], 4294965760  ;;  %v410_v0 = vmov 0.0|0.0   ;;  %vm411_vm0 = vmmov 0   ;;  %v412_v1 = vmov 0.0   ;;  %v60_v2 = vld [vmem:[#allocation4] sm:$0xff] }
  0x36   :  { %302 = vmatprep.subr.bf16.mxu0 %v410_v0  ;;  %280 = vmatprep.mubr.msk.f32.mxu0 %vm411_vm0, %v412_v1  ;;  %v61_v3 = vld [vmem:[#allocation4 + $0x8] sm:$0xff]  ;;  %v62_v4 = vld [vmem:[#allocation4 + $0x10] sm:$0xff]  ;;  %v63_v6 = vld [vmem:[#allocation4 + $0x18] sm:$0xff]  ;;  %vm71_vm1 = vcmask 261120   ;;  %s413_s29 = smov 64   ;;  %vm172_vm2 = vcmask 523264  }
  0x37   :  { %308 = vmatprep.subr.bf16.mxu1 %v410_v0  ;;  %299 = vmatprep.mubr.msk.f32.mxu1 %vm411_vm0, %v412_v1  ;;  %v303_v5 = vpack.c.bf16 %v61_v3, %v60_v2  ;;  %v306_v7 = vpack.c.bf16 %v63_v6, %v62_v4  ;;  %v59_v8 = vld [vmem:[#allocation2] sm:$0xff]  ;;  %v157_v9 = vld [vmem:[#allocation6] sm:$0xff]  ;;  %v158_v10 = vld [vmem:[#allocation6 + $0x8] sm:$0xff] }
  0x38   :  { %v159_v11 = vld [vmem:[#allocation6 + $0x10] sm:$0xff]  ;;  %v309_v12 = vpack.c.bf16 %v158_v10, %v157_v9  ;;  %v160_v13 = vld [vmem:[#allocation6 + $0x18] sm:$0xff]  ;;  %v161_v15 = vld [vmem:[#allocation6 + $0x20] sm:$0xff] }
  0x39   :  { %304 = vmatpush3.bf16.msra.mxu0 %v303_v5  ;;  %v312_v14 = vpack.c.bf16 %v160_v13, %v159_v11  ;;  %v162_v16 = vld [vmem:[#allocation6 + $0x28] sm:$0xff]  ;;  %v253_v18 = vld [vmem:[%s497_s2] ss:$0 sm:$0xff]  ;;  %v163_v23 = vld [vmem:[#allocation6 + $0x30] sm:$0xff] }
  0x3a   :  { %305 = vmatprep.subr.bf16.mxu0 %v410_v0  ;;  %310 = vmatpush3.bf16.msra.mxu1 %v309_v12  ;;  %v315_v17 = vpack.c.bf16 %v162_v16, %v161_v15  ;;  %v164_v24 = vld [vmem:[#allocation6 + $0x38] sm:$0xff] }
  0x3b   :  { %311 = vmatprep.subr.bf16.mxu1 %v410_v0  ;;  %v318_v25 = vpack.c.bf16 %v164_v24, %v163_v23  ;;  %v256_v32 = vld [vmem:[%s499_s4] ss:$0 sm:$0xff] }
  0x3d   :  { %307 = vmatpush3.bf16.msra.mxu0 %v306_v7 }
  0x3e   :  { %313 = vmatpush3.bf16.msra.mxu1 %v312_v14 }
  0x3f   :  { %314 = vmatprep.subr.bf16.mxu1 %v410_v0 }
  0x40   :  { %281 = vmatmul.mubr.msk.f32.vlgmr.msra.gmra.mrb[0].mxu0 %vm71_vm1, %v59_v8 }
  0x42   :  { %316 = vmatpush3.bf16.msra.mxu1 %v315_v17 }
  0x43   :  { %317 = vmatprep.subr.bf16.mxu1 %v410_v0 }
  0x46   :  { %319 = vmatpush3.bf16.msra.mxu1 %v318_v25 }
 0x113   :  { %v141_v19 = vpop.f32.mrb[0].mxu0 }
 0x114   :  { %v142_v20 = vadd.f32 %v253_v18, %v141_v19  ;;  %v282_v21 = vpop.f32.mrb[1].mxu0 }
 0x116   :  { %v255_v22 = vmul.f32 -1.442695, %v142_v20 }
 0x118   :  { %329 = vpow2.f32 %v255_v22 }
 0x122   :  { %v330_v26 = vpop.eup %329 }
 0x123   :  { %v149_v27 = vadd.f32 1.0, %v330_v26 }
 0x125   :  { %331 = vrcp.f32 %v149_v27 }
 0x126   :  { %333 = vtanh.f32 %v142_v20 }
 0x12f   :  { %v332_v28 = vpop.eup %331 }
 0x130   :  { %153 = vrot.lane.b32.xlu0 %v332_v28, %s413_s29  ;;  %v334_v29 = vpop.eup %333 }
 0x1a2   :  { %v154_v30 = vpop.permute.xlu0 %153 }
 0x1a3   :  { %v156_v31 = vmul.f32 %v334_v29, %v154_v30 }
 0x1a5   :  { %300 = vmatmul.mubr.msk.f32.vlgmr.msra.gmra.mrb[0].mxu1 %vm172_vm2, %v156_v31 }
 0x278   :  { %v242_v33 = vpop.f32.mrb[0].mxu1 }
 0x279   :  { %v243_v34 = vadd.f32 %v256_v32, %v242_v33  ;;  %v301_v35 = vpop.f32.mrb[1].mxu1 }
 0x27b   :  { %246 = vst [vmem:[%s500_s5] sm:$0xff] %v243_v34 }
 0x27c   :  { %251 = vsyncpa [#allocation3], 1 }
 0x27d   :  { %252 = vsyncpa [#allocation5], 1 }

</bundles_post_ra>
